<compile_context>
chip_gen: v7x
topology: tpu7x:2x2x1
jax: 0.10.0
libtpu: 0.0.40
codegen_flags: <defaults>
</compile_context>

<pallas_src>
import functools
import math

import jax
import jax.numpy as jnp
from jax.experimental import pallas as pl
from jax.experimental.pallas import tpu as pltpu


def _gelu_linear_kernel(x_ref, w_ref, b_ref, o_ref, acc_ref, *, approximate: str):
    # x_ref: (tm, tk)   w_ref: (tn, tk)   b_ref: (1, tn)
    # o_ref: (tm, tn)   acc_ref: (tm, tn) f32 scratch
    k = pl.program_id(2)

    @pl.when(k == 0)
    def _():
        acc_ref[...] = jnp.zeros_like(acc_ref)

    # Contract last axes of x and W (W stays in PyTorch (dim_out, dim_in)
    # layout); native-dtype operands hit the MXU, accumulation is f32.
    acc_ref[...] += jax.lax.dot_general(
        x_ref[...], w_ref[...],
        dimension_numbers=(((1,), (1,)), ((), ())),
        preferred_element_type=jnp.float32,
    )

    @pl.when(k == pl.num_programs(2) - 1)
    def _():
        y = acc_ref[...] + b_ref[...].astype(jnp.float32)
        if approximate == "tanh":
            c = math.sqrt(2.0 / math.pi)
            g = 0.5 * y * (1.0 + jnp.tanh(c * (y + 0.044715 * (y * y * y))))
        else:  # exact GELU: 0.5 * x * (1 + erf(x / sqrt(2)))
            g = 0.5 * y * (1.0 + jax.lax.erf(y * (1.0 / math.sqrt(2.0))))
        o_ref[...] = g.astype(o_ref.dtype)


def _round_up(x: int, m: int) -> int:
    return ((x + m - 1) // m) * m


def _pick_tile(dim: int, candidates) -> int:
    # Largest candidate that exactly divides `dim`; otherwise use the full dim
    # (a block equal to the full array dim is always layout-legal on TPU).
    for c in candidates:
        if dim >= c and dim % c == 0:
            return c
    return dim


def gelu_proj(hidden_states, weight, bias=None, approximate="none", tm=256):
    """Fused y = GELU(hidden_states @ weight.T + bias).

    `weight` is in PyTorch nn.Linear layout: (dim_out, dim_in).
    """
    *lead, dim_in = hidden_states.shape
    dim_out, k_w = weight.shape
    assert k_w == dim_in, (weight.shape, dim_in)

    x2d = hidden_states.reshape(-1, dim_in)
    M = x2d.shape[0]

    if bias is None:
        bias = jnp.zeros((dim_out,), dtype=hidden_states.dtype)
    b2d = bias.reshape(1, dim_out)

    # Tile sizes: tm multiple of 8; tn lane-dense (multiple of 128) when
    # possible; tk a multiple of 128 only if it divides dim_in exactly (K is a
    # reduction axis, so ragged K blocks are not allowed), else full dim_in.
    tm = min(tm, _round_up(M, 8))
    tn = _pick_tile(dim_out, (512, 256, 128))
    tk = _pick_tile(dim_in, (512, 256, 128))

    grid = (pl.cdiv(M, tm), dim_out // tn, dim_in // tk)

    kernel = functools.partial(_gelu_linear_kernel, approximate=approximate)

    # VMEM budget: double-buffered x / W / bias / out tiles + f32 accumulator.
    # Sized from the actual working set so it stays safe on v7x's smaller VMEM.
    itemsize = max(x2d.dtype.itemsize, weight.dtype.itemsize)
    working = 2 * (tm * tk + tn * tk + tm * tn + tn) * itemsize + tm * tn * 4
    vmem_limit = int(min(max(2 * working, 16 * 1024 * 1024), 48 * 1024 * 1024))

    cost = pl.CostEstimate(
        flops=2 * M * dim_in * dim_out,
        transcendentals=M * dim_out,
        bytes_accessed=(M * dim_in + dim_out * dim_in + dim_out + M * dim_out)
        * itemsize,
    )

    out = pl.pallas_call(
        kernel,
        out_shape=jax.ShapeDtypeStruct((M, dim_out), hidden_states.dtype),
        grid_spec=pltpu.PrefetchScalarGridSpec(
            num_scalar_prefetch=0,
            grid=grid,
            in_specs=[
                pl.BlockSpec((tm, tk), lambda i, j, k: (i, k)),   # x row tile
                pl.BlockSpec((tn, tk), lambda i, j, k: (j, k)),   # W tile (native layout)
                pl.BlockSpec((1, tn), lambda i, j, k: (0, j)),    # bias tile
            ],
            out_specs=pl.BlockSpec((tm, tn), lambda i, j, k: (i, j)),
            scratch_shapes=[pltpu.VMEM((tm, tn), jnp.float32)],
        ),
        compiler_params=pltpu.CompilerParams(
            dimension_semantics=("parallel", "parallel", "arbitrary"),
            vmem_limit_bytes=vmem_limit,
        ),
        cost_estimate=cost,
    )(x2d, weight, b2d)

    return out.reshape(*lead, dim_out)


if __name__ == "__main__":
    # Module config: GELU(dim_in=32, dim_out=64, approximate=..., bias=True)
    dim_in, dim_out = 32, 64
    batch, seq = 2, 8

    key = jax.random.PRNGKey(0)
    k_x, k_w, k_b = jax.random.split(key, 3)

    x = jax.random.normal(k_x, (batch, seq, dim_in), dtype=jnp.float32)
    bound = 1.0 / math.sqrt(dim_in)
    weight = jax.random.uniform(k_w, (dim_out, dim_in), jnp.float32, -bound, bound)
    bias = jax.random.uniform(k_b, (dim_out,), jnp.float32, -bound, bound)

    def ref(xv, approximate):
        h = xv @ weight.T + bias
        if approximate == "tanh":
            c = math.sqrt(2.0 / math.pi)
            return 0.5 * h * (1.0 + jnp.tanh(c * (h + 0.044715 * h ** 3)))
        return 0.5 * h * (1.0 + jax.lax.erf(h / math.sqrt(2.0)))

    # Exact GELU path (approximate='none').
    y = jax.block_until_ready(gelu_proj(x, weight, bias, approximate="none"))
    assert y.shape == (batch, seq, dim_out)
    assert jnp.allclose(y, ref(x, "none"), atol=1e-5, rtol=1e-5)

    # Tanh-approximation path, value-checked this time.
    y_t = jax.block_until_ready(gelu_proj(x, weight, bias, approximate="tanh"))
    assert jnp.allclose(y_t, ref(x, "tanh"), atol=1e-5, rtol=1e-5)

    # Ragged row count (M not a multiple of the tile) exercises the no-pad path.
    x_rag = jax.random.normal(key, (3, 5, dim_in), dtype=jnp.float32)
    y_rag = jax.block_until_ready(gelu_proj(x_rag, weight, bias))
    assert y_rag.shape == (3, 5, dim_out)
    assert jnp.allclose(y_rag, ref(x_rag, "none"), atol=1e-5, rtol=1e-5)

    # bf16 activations/weights feed the MXU natively (f32 accumulate inside).
    y_bf = jax.block_until_ready(
        gelu_proj(x.astype(jnp.bfloat16), weight.astype(jnp.bfloat16),
                  bias.astype(jnp.bfloat16)))
    assert y_bf.dtype == jnp.bfloat16
    assert jnp.allclose(y_bf.astype(jnp.float32), ref(x, "none"),
                        atol=5e-2, rtol=5e-2)

    print("KERNEL_OK")
</pallas_src>

<mosaic_0001>
module attributes {stable_mosaic.version = 11 : i64} {
  func.func @_gelu_linear_kernel(%arg0: i32, %arg1: i32, %arg2: i32, %arg3: memref<16x32xf32, #tpu.memory_space<vmem>>, %arg4: memref<64x32xf32, #tpu.memory_space<vmem>>, %arg5: memref<1x64xf32, #tpu.memory_space<vmem>>, %arg6: memref<16x64xf32, #tpu.memory_space<vmem>>, %arg7: memref<16x64xf32, #tpu.memory_space<vmem>>) attributes {dimension_semantics = [#tpu.dimension_semantics<parallel>, #tpu.dimension_semantics<parallel>, #tpu.dimension_semantics<arbitrary>], iteration_bounds = array<i64: 1, 1, 1>, scalar_prefetch = 0 : i64, scratch_operands = 1 : i64, tpu.core_type = #tpu.core_type<tc>, window_params = [{transform_indices = @transform_0, window_bounds = array<i64: 16, 32>}, {transform_indices = @transform_1, window_bounds = array<i64: 64, 32>}, {transform_indices = @transform_2, window_bounds = array<i64: 1, 64>}, {transform_indices = @transform_3, window_bounds = array<i64: 16, 64>}]} {
    %c0_i32 = arith.constant 0 : i32
    %0 = arith.cmpi eq, %arg2, %c0_i32 : i32
    %1 = arith.extui %0 : i1 to i32
    %c0_i32_0 = arith.constant 0 : i32
    %2 = arith.cmpi ne, %1, %c0_i32_0 : i32
    scf.if %2 {
      %cst_10 = arith.constant 0.000000e+00 : f32
      %12 = vector.broadcast %cst_10 : f32 to vector<16x64xf32>
      %c0_11 = arith.constant 0 : index
      %c0_12 = arith.constant 0 : index
      %13 = vector.load %arg7[%c0_11, %c0_12] : memref<16x64xf32, #tpu.memory_space<vmem>>, vector<16x64xf32>
      tpu.vector_store %arg7[%c0_11, %c0_12], %12 {strides = array<i32>} : memref<16x64xf32, #tpu.memory_space<vmem>>, vector<16x64xf32>,
    } else {
    }
    %c0 = arith.constant 0 : index
    %c0_1 = arith.constant 0 : index
    %3 = vector.load %arg7[%c0, %c0_1] : memref<16x64xf32, #tpu.memory_space<vmem>>, vector<16x64xf32>
    %c0_2 = arith.constant 0 : index
    %c0_3 = arith.constant 0 : index
    %4 = vector.load %arg3[%c0_2, %c0_3] : memref<16x32xf32, #tpu.memory_space<vmem>>, vector<16x32xf32>
    %c0_4 = arith.constant 0 : index
    %c0_5 = arith.constant 0 : index
    %5 = vector.load %arg4[%c0_4, %c0_5] : memref<64x32xf32, #tpu.memory_space<vmem>>, vector<64x32xf32>
    %cst = arith.constant dense<0.000000e+00> : vector<16x64xf32>
    %6 = tpu.matmul %4, %5, %cst {dimension_numbers = #tpu.dot_dimension_numbers<[1], [1], [0], [0], [0, 0, 1, 0], [], []>} : vector<16x32xf32>, vector<64x32xf32>, vector<16x64xf32> -> vector<16x64xf32>
    %7 = arith.addf %3, %6 : vector<16x64xf32>
    %c0_6 = arith.constant 0 : index
    %c0_7 = arith.constant 0 : index
    %8 = vector.load %arg7[%c0_6, %c0_7] : memref<16x64xf32, #tpu.memory_space<vmem>>, vector<16x64xf32>
    tpu.vector_store %arg7[%c0_6, %c0_7], %7 {strides = array<i32>} : memref<16x64xf32, #tpu.memory_space<vmem>>, vector<16x64xf32>,
    %c0_i32_8 = arith.constant 0 : i32
    %9 = arith.cmpi eq, %arg2, %c0_i32_8 : i32
    %10 = arith.extui %9 : i1 to i32
    %c0_i32_9 = arith.constant 0 : i32
    %11 = arith.cmpi ne, %10, %c0_i32_9 : i32
    scf.if %11 {
      %c0_10 = arith.constant 0 : index
      %c0_11 = arith.constant 0 : index
      %12 = vector.load %arg7[%c0_10, %c0_11] : memref<16x64xf32, #tpu.memory_space<vmem>>, vector<16x64xf32>
      %c0_12 = arith.constant 0 : index
      %c0_13 = arith.constant 0 : index
      %13 = vector.load %arg5[%c0_12, %c0_13] : memref<1x64xf32, #tpu.memory_space<vmem>>, vector<1x64xf32>
      %14 = vector.broadcast %13 : vector<1x64xf32> to vector<16x64xf32>
      %15 = arith.addf %12, %14 : vector<16x64xf32>
      %cst_14 = arith.constant 5.000000e-01 : f32
      %16 = vector.broadcast %cst_14 : f32 to vector<16x64xf32>
      %17 = arith.mulf %16, %15 : vector<16x64xf32>
      %cst_15 = arith.constant 0.707106769 : f32
      %18 = vector.broadcast %cst_15 : f32 to vector<16x64xf32>
      %19 = arith.mulf %15, %18 : vector<16x64xf32>
      %20 = math.erf %19 : vector<16x64xf32>
      %cst_16 = arith.constant 1.000000e+00 : f32
      %21 = vector.broadcast %cst_16 : f32 to vector<16x64xf32>
      %22 = arith.addf %21, %20 : vector<16x64xf32>
      %23 = arith.mulf %17, %22 : vector<16x64xf32>
      %c0_17 = arith.constant 0 : index
      %c0_18 = arith.constant 0 : index
      %24 = vector.load %arg6[%c0_17, %c0_18] : memref<16x64xf32, #tpu.memory_space<vmem>>, vector<16x64xf32>
      tpu.vector_store %arg6[%c0_17, %c0_18], %23 {strides = array<i32>} : memref<16x64xf32, #tpu.memory_space<vmem>>, vector<16x64xf32>,
    } else {
    }
    return
  }
  func.func @transform_0(%arg0: i32, %arg1: i32, %arg2: i32) -> (i32, i32) {
    %c0_i32 = arith.constant 0 : i32
    return %arg0, %arg2 : i32, i32
  }
  func.func @transform_1(%arg0: i32, %arg1: i32, %arg2: i32) -> (i32, i32) {
    %c0_i32 = arith.constant 0 : i32
    return %arg1, %arg2 : i32, i32
  }
  func.func @transform_2(%arg0: i32, %arg1: i32, %arg2: i32) -> (i32, i32) {
    %c0_i32 = arith.constant 0 : i32
    %c0_i32_0 = arith.constant 0 : i32
    return %c0_i32, %arg1 : i32, i32
  }
  func.func @transform_3(%arg0: i32, %arg1: i32, %arg2: i32) -> (i32, i32) {
    %c0_i32 = arith.constant 0 : i32
    return %arg0, %arg1 : i32, i32
  }
}

</mosaic_0001>

<bundles_post_ra>
// kernel: tpu_custom_call.1
= control target key start
LH: loop header
LB: loop body
LE: loop exit
PB: predicated region body
PF: predicated region fallthrough
CT: control target
= control target key end

     0   :  { %vm34_vm0 = vcmask 261120   ;;  %vm19_vm1 = vcmask 523264   ;;  %v283_v6 = vmov 0.0   ;;  %s382_s0 = inlined_call_operand.vmem [shape: f32[16,32], index: 0, kind: input, shape index: {}]   ;;  %s383_s1 = inlined_call_operand.vmem [shape: f32[64,32], index: 1, kind: input, shape index: {}]   ;;  %s384_s2 = inlined_call_operand.vmem [shape: f32[1,64], index: 2, kind: input, shape index: {}]   ;;  %s385_s3 = inlined_call_operand.hbm [shape: f32[16,64], index: 3, kind: output, shape index: {}]  }
   0x1   :  { %v26_v0 = vld [vmem:[%s383_s1] sm:$0xff]  ;;  %v27_v1 = vld [vmem:[%s383_s1 + $0x8] sm:$0xff]  ;;  %v28_v2 = vld [vmem:[%s383_s1 + $0x10] sm:$0xff]  ;;  %21 = vst.msk [vmem:[#allocation2 + $0x8] sm:$0xff] %vm19_vm1, %v283_v6 }
   0x2   :  { %v227_v3 = vpack.c.bf16 %v27_v1, %v26_v0  ;;  %vm318_vm2 = vmpackc.low %vm34_vm0, %vm34_vm0  ;;  %v29_v5 = vld [vmem:[%s383_s1 + $0x18] sm:$0xff]  ;;  %20 = vst.msk [vmem:[#allocation2] sm:$0xff] %vm19_vm1, %v283_v6  ;;  %v24_v8 = vld [vmem:[%s382_s0] sm:$0xff] }
   0x3   :  { %v233_v7 = vpack.c.bf16 %v29_v5, %v28_v2 }
   0x4   :  { %229 = vmatprep.subr.msk.bf16.mxu0 %vm318_vm2, %v227_v3 }
   0x5   :  { %8 = vsyncpa [#allocation4], 0  ;;  %232 = vmatpush3.bf16.xpose.msk.msra.mxu0 %vm318_vm2, %v227_v3  ;;  %224 = vmatprep.mubr.msk.f32.mxu0 %vm34_vm0, %v24_v8  ;;  %v30_v9 = vld [vmem:[%s383_s1 + $0x20] sm:$0xff]  ;;  %v31_v10 = vld [vmem:[%s383_s1 + $0x28] sm:$0xff] }
   0x6   :  { %235 = vmatprep.subr.msk.bf16.mxu0 %vm318_vm2, %v233_v7  ;;  %v239_v11 = vpack.c.bf16 %v31_v10, %v30_v9  ;;  %v32_v12 = vld [vmem:[%s383_s1 + $0x30] sm:$0xff]  ;;  %v33_v13 = vld [vmem:[%s383_s1 + $0x38] sm:$0xff]  ;;  %v25_v15 = vld [vmem:[%s382_s0 + $0x8] sm:$0xff]  ;;  %s284_s0 = smov [#allocation3]  }
   0x7   :  { %v245_v14 = vpack.c.bf16 %v33_v13, %v32_v12  ;;  %v197_v22 = vld [vmem:[%s384_s2] ss:$0 sm:$0xff]  ;;  %s176_s6 = sshll.u32 %s284_s0, 4  ;;  %s177_s6 = int_to_ptr.vmem [resolvable:$true] %s176_s6 }
   0x8   :  { %v23_v16 = vld [vmem:[#allocation2 + $0x8] sm:$0xff]  ;;  %s259_s2 = scalar_lea.vmem %s177_s6, 256  ;;  %p264_p1 = scmp.lt.s32.totalorder %s177_s6, %s177_s6 }
   0x9   :  { %v22_v17 = vld [vmem:[#allocation2] sm:$0xff]  ;;  %p260_p0 = scmp.ne.s32.totalorder %s177_s6, %s259_s2  ;;  %p265_p2 = scmp.lt.s32.totalorder %s259_s2, %s259_s2 }
   0xb   :  { %p266_p3 = por %p265_p2, %p264_p1 }
   0xd   :  { %238 = vmatpush3.bf16.xpose.msk.msra.mxu0 %vm318_vm2, %v233_v7  ;;  %p267_p4 = pnand %p266_p3, %p260_p0 }
   0xe   :  { %241 = vmatprep.subr.msk.bf16.mxu0 %vm318_vm2, %v239_v11 }
  0x15   :  { %244 = vmatpush3.bf16.xpose.msk.msra.mxu0 %vm318_vm2, %v239_v11 }
  0x16   :  { %247 = vmatprep.subr.msk.bf16.mxu0 %vm318_vm2, %v245_v14 }
  0x1d   :  { %250 = vmatpush3.bf16.xpose.msk.msra.mxu0 %vm318_vm2, %v245_v14 }
  0x24   :  { %225 = vmatmul.mubr.msk.f32.vlgmr.msra.gmra.mrb[0].mxu0 %vm34_vm0, %v25_v15 }
  0xf7   :  { %v226_v18 = vpop.f32.mrb[0].mxu0 }
  0xf8   :  { %v141_v19 = vadd.f32 %v226_v18, %v23_v16  ;;  %v131_v20 = vpop.f32.mrb[1].mxu0 }
  0xf9   :  { %v140_v21 = vadd.f32 %v131_v20, %v22_v17 }
  0xfa   :  { %144 = vst.msk [vmem:[#allocation2 + $0x8] sm:$0xff] %vm19_vm1, %v141_v19 }
  0xfb   :  { %143 = vst.msk [vmem:[#allocation2] sm:$0xff] %vm19_vm1, %v140_v21 }
 0x101   :  { %v149_v23 = vld [vmem:[#allocation2 + $0x8] sm:$0xff] }
 0x102   :  { %v148_v24 = vld [vmem:[#allocation2] sm:$0xff]  ;;  %v158_v25 = vadd.f32 %v197_v22, %v149_v23 }
 0x103   :  { %v157_v26 = vadd.f32 %v197_v22, %v148_v24 }
 0x104   :  { %v162_v27 = vmul.f32 0.70710677, %v158_v25  ;;  %v160_v31 = vmul.f32 0.5, %v158_v25 }
 0x105   :  { %v161_v28 = vmul.f32 0.70710677, %v157_v26  ;;  %v159_v33 = vmul.f32 0.5, %v157_v26 }
 0x106   :  { %255 = verf.f32 %v162_v27 }
 0x107   :  { %257 = verf.f32 %v161_v28 }
 0x110   :  { %v256_v29 = vpop.eup %255 }
 0x111   :  { %v258_v30 = vpop.eup %257  ;;  %v166_v32 = vadd.f32 1.0, %v256_v29 }
 0x112   :  { %v165_v34 = vadd.f32 1.0, %v258_v30 }
 0x113   :  { %v168_v35 = vmul.f32 %v166_v32, %v160_v31 }
 0x114   :  { %v167_v36 = vmul.f32 %v165_v34, %v159_v33 }
 0x115   :  { %170 = vst.msk [vmem:[#allocation3 + $0x8] sm:$0xff] %vm19_vm1, %v168_v35 }
 0x116   :  { %169 = vst.msk [vmem:[#allocation3] sm:$0xff] %vm19_vm1, %v167_v36 }
 0x117   :  { %270 = shalt.err (!%p267_p4)
}
 0x118   :  { %s271_s9 = scalar_lea.hbm %s385_s3, 256 }
 0x119   :  { %p272_p5 = scmp.ne.s32.totalorder %s385_s3, %s271_s9  ;;  %p275_p6 = scmp.lt.u32.totalorder %s271_s9, %s385_s3 }
 0x11b   :  { %p277_p7 = pnand %p275_p6, %p272_p5 }
 0x11d   :  { %280 = shalt.err (!%p277_p7)
}
 0x11e   :  { %s285_s14 = smov 128   ;;  %s286_s15 = smov 8  }
 0x11f   :  { %182 = dma.vmem_to_hbm [thread:$0]  %s177_s6, 256, %s385_s3, [#allocation4], %s285_s14, %s285_s14, %s286_s15  }
 0x120   :  { %281 = dma.done.wait [#allocation4], 256  }
 0x121   :  { %282 = vsyncadd [#allocation4], 4294967040 }
 0x122   :  { %186 = vsyncpa [#allocation4], 1 }

</bundles_post_ra>
